<compile_context>
chip_gen: v6e
topology: v6e:2x2x1
jax: 0.10.0
libtpu: 0.0.40
codegen_flags: <defaults>
</compile_context>

<pallas_src>
import functools

import jax
import jax.numpy as jnp
from jax import lax
from jax.experimental import pallas as pl
from jax.experimental.pallas import tpu as pltpu

_HALO = 128  # lane-tile-aligned halo width (only needs >= W+1)


def _detection_head_kernel(x_ref, w_ref, b_ref, cls_ref, box_ref, halo_ref,
                           *, H, W, Ccls, Ccls_pad):
    """One grid step = one batch element.

    x_ref    : (1, C, H*W)              flattened NCHW input (no wrapper pad)
    w_ref    : (Ctot_pad, 9*C)          fused (class | zero-pad | bbox) weights
    b_ref    : (Ctot_pad, 1)            fused bias (zero rows in the pad block)
    cls_ref  : (1, Ccls, H*W)           class logits (lane-dense)
    box_ref  : (1, Cbox, H*W)           bbox regression (lane-dense)
    halo_ref : (C, H*W + 2*_HALO)       VMEM scratch giving the zero halo
    """
    C = x_ref.shape[1]
    HW = H * W
    Cbox = box_ref.shape[1]

    # --- Build the zero-halo view in VMEM (replaces the wrapper jnp.pad). ---
    # Both halo strips are 128 lanes wide -> aligned, unmasked stores; they are
    # re-zeroed every grid step so the kernel is megacore-safe (each core's
    # scratch is fully initialized by every step it runs).
    zeros_strip = jnp.zeros((C, _HALO), halo_ref.dtype)
    halo_ref[:, :_HALO] = zeros_strip
    halo_ref[:, _HALO + HW:] = zeros_strip
    halo_ref[:, _HALO:_HALO + HW] = x_ref[0]           # lane-aligned copy

    # w-boundary masks; the h-boundary is handled by the zero halo.
    ww = lax.broadcasted_iota(jnp.int32, (C, HW), 1) % W
    mask_l = ww > 0               # neighbour (w - 1) exists
    mask_r = ww < (W - 1)         # neighbour (w + 1) exists

    w = w_ref[...]                # (Ctot_pad, 9*C)  resident across grid steps
    b = b_ref[...]                # (Ctot_pad, 1)

    # --- Accumulate the 9 conv taps directly on the MXU (no slab scratch). ---
    acc = None
    for kh in range(3):
        for kw in range(3):
            dh, dw = kh - 1, kw - 1
            start = _HALO + dh * W + dw                # static lane offset
            slab = halo_ref[:, start:start + HW]       # (C, H*W)
            if dw < 0:
                slab = jnp.where(mask_l, slab, 0.0)
            elif dw > 0:
                slab = jnp.where(mask_r, slab, 0.0)
            t = kh * 3 + kw
            part = jnp.dot(w[:, t * C:(t + 1) * C], slab,
                           preferred_element_type=jnp.float32)
            acc = part if acc is None else acc + part
    acc = acc + b                                      # lane broadcast

    # Aligned split: class rows start at 0, bbox rows start at Ccls_pad (mult
    # of 8); the zero-pad rows in between are simply not stored.
    cls_ref[...] = acc[:Ccls].reshape(cls_ref.shape).astype(cls_ref.dtype)
    box_ref[...] = acc[Ccls_pad:Ccls_pad + Cbox].reshape(
        box_ref.shape).astype(box_ref.dtype)


def pack_detection_head_params(params):
    """One-time weight/bias repack (hoisted out of the per-call forward).

    Returns w2: (Ccls_pad + Cbox, 9*C) with column index (kh*3 + kw)*C + c and
    zero rows [Ccls, Ccls_pad); b2: (Ccls_pad + Cbox, 1) with matching zeros.
    """
    wc, bc = params["class_w"], params["class_b"]   # (3,3,C,Ccls), (Ccls,)
    wb, bb = params["bbox_w"], params["bbox_b"]     # (3,3,C,Cbox), (Cbox,)
    C = wc.shape[2]
    Ccls, Cbox = wc.shape[-1], wb.shape[-1]
    Ccls_pad = ((Ccls + 7) // 8) * 8                # sublane-align the split

    def repack(w):   # HWIO (3,3,C,Cout) -> (Cout, 9*C)
        return jnp.transpose(w, (3, 0, 1, 2)).reshape(w.shape[-1], 9 * C)

    pad = Ccls_pad - Ccls
    w2 = jnp.concatenate(
        [repack(wc), jnp.zeros((pad, 9 * C), wc.dtype), repack(wb)], axis=0)
    b2 = jnp.concatenate([bc, jnp.zeros((pad,), bc.dtype), bb], axis=0)[:, None]
    return w2, b2, Ccls, Cbox


def detection_head_forward(x_nchw, w2, b2, *, Ccls, Cbox):
    """Pallas forward. x_nchw: (N, C, H, W). Returns NCHW (classes, bboxes)."""
    N, C, H, W = x_nchw.shape
    HW = H * W
    Ctot_pad = w2.shape[0]
    Ccls_pad = Ctot_pad - Cbox

    x_flat = x_nchw.reshape(N, C, HW)               # free reshape, no pad

    kernel = functools.partial(_detection_head_kernel, H=H, W=W,
                               Ccls=Ccls, Ccls_pad=Ccls_pad)
    cls_flat, box_flat = pl.pallas_call(
        kernel,
        out_shape=(
            jax.ShapeDtypeStruct((N, Ccls, HW), x_nchw.dtype),
            jax.ShapeDtypeStruct((N, Cbox, HW), x_nchw.dtype),
        ),
        grid=(N,),
        in_specs=[
            pl.BlockSpec((1, C, HW), lambda b: (b, 0, 0)),
            pl.BlockSpec((Ctot_pad, 9 * C), lambda b: (0, 0)),   # resident
            pl.BlockSpec((Ctot_pad, 1), lambda b: (0, 0)),       # resident
        ],
        out_specs=(
            pl.BlockSpec((1, Ccls, HW), lambda b: (b, 0, 0)),
            pl.BlockSpec((1, Cbox, HW), lambda b: (b, 0, 0)),
        ),
        scratch_shapes=[pltpu.VMEM((C, HW + 2 * _HALO), x_nchw.dtype)],
        compiler_params=pltpu.CompilerParams(
            dimension_semantics=("parallel",)),
    )(x_flat, w2, b2)

    # Free reshapes: outputs are already NCHW-ordered with H*W flattened.
    return cls_flat.reshape(N, Ccls, H, W), box_flat.reshape(N, Cbox, H, W)


def init_detection_head_params(key, in_channels, num_anchors, num_classes):
    """Deterministic init mimicking PyTorch Conv2d default (kaiming-uniform)."""
    Ccls = num_anchors * (num_classes + 1)
    Cbox = num_anchors * 4
    fan_in = in_channels * 3 * 3
    bound = 1.0 / jnp.sqrt(fan_in)
    k1, k2, k3, k4 = jax.random.split(key, 4)
    # Weights stored in HWIO layout: (3, 3, Cin, Cout).
    return {
        "class_w": jax.random.uniform(k1, (3, 3, in_channels, Ccls),
                                      jnp.float32, -bound, bound),
        "class_b": jax.random.uniform(k2, (Ccls,), jnp.float32, -bound, bound),
        "bbox_w": jax.random.uniform(k3, (3, 3, in_channels, Cbox),
                                     jnp.float32, -bound, bound),
        "bbox_b": jax.random.uniform(k4, (Cbox,), jnp.float32, -bound, bound),
    }


def _reference_forward(x_nchw, params):
    """Pure-JAX reference (lax conv) for correctness checking."""
    def conv(w, b):
        y = lax.conv_general_dilated(
            x_nchw, jnp.transpose(w, (3, 2, 0, 1)),  # HWIO -> OIHW
            window_strides=(1, 1), padding=((1, 1), (1, 1)),
            dimension_numbers=("NCHW", "OIHW", "NCHW"))
        return y + b[None, :, None, None]
    return conv(params["class_w"], params["class_b"]), \
           conv(params["bbox_w"], params["bbox_b"])


if __name__ == "__main__":
    # Small shapes consistent with the module: batch=2, in_channels=4,
    # spatial 16x16, num_anchors=3, num_classes=5.
    N, C, H, W = 2, 4, 16, 16
    num_anchors, num_classes = 3, 5

    key = jax.random.PRNGKey(0)
    kx, kp = jax.random.split(key)
    x = jax.random.normal(kx, (N, C, H, W), jnp.float32)
    params = init_detection_head_params(kp, C, num_anchors, num_classes)

    # One-time parameter packing (kept out of the per-call forward).
    w2, b2, Ccls, Cbox = pack_detection_head_params(params)
    w2, b2 = jax.block_until_ready((w2, b2))

    classes, bboxes = detection_head_forward(x, w2, b2, Ccls=Ccls, Cbox=Cbox)
    jax.block_until_ready((classes, bboxes))

    # Sanity check against a pure-JAX conv reference.
    ref_cls, ref_box = _reference_forward(x, params)
    assert classes.shape == (N, num_anchors * (num_classes + 1), H, W)
    assert bboxes.shape == (N, num_anchors * 4, H, W)
    assert jnp.allclose(classes, ref_cls, atol=5e-4, rtol=5e-4)
    assert jnp.allclose(bboxes, ref_box, atol=5e-4, rtol=5e-4)

    print("KERNEL_OK")
</pallas_src>

<mosaic_0001>
module attributes {stable_mosaic.version = 11 : i64} {
  func.func @_detection_head_kernel(%arg0: i32, %arg1: memref<1x4x256xf32, #tpu.memory_space<vmem>>, %arg2: memref<36x36xf32, #tpu.memory_space<vmem>>, %arg3: memref<36x1xf32, #tpu.memory_space<vmem>>, %arg4: memref<1x18x256xf32, #tpu.memory_space<vmem>>, %arg5: memref<1x12x256xf32, #tpu.memory_space<vmem>>, %arg6: memref<4x512xf32, #tpu.memory_space<vmem>>) attributes {dimension_semantics = [#tpu.dimension_semantics<parallel>], iteration_bounds = array<i64: 2>, scalar_prefetch = 0 : i64, scratch_operands = 1 : i64, tpu.core_type = #tpu.core_type<tc>, window_params = [{transform_indices = @transform_0, window_bounds = array<i64: 1, 4, 256>}, {pipeline_mode = #tpu.pipeline_mode<synchronous>, transform_indices = @transform_1, window_bounds = array<i64: 36, 36>}, {pipeline_mode = #tpu.pipeline_mode<synchronous>, transform_indices = @transform_2, window_bounds = array<i64: 36, 1>}, {transform_indices = @transform_3, window_bounds = array<i64: 1, 18, 256>}, {transform_indices = @transform_4, window_bounds = array<i64: 1, 12, 256>}]} {
    %cst = arith.constant 0.000000e+00 : f32
    %0 = vector.broadcast %cst : f32 to vector<4x128xf32>
    %c0 = arith.constant 0 : index
    %c0_0 = arith.constant 0 : index
    %1 = vector.load %arg6[%c0, %c0_0] : memref<4x512xf32, #tpu.memory_space<vmem>>, vector<4x128xf32>
    tpu.vector_store %arg6[%c0, %c0_0], %0 {strides = array<i32>} : memref<4x512xf32, #tpu.memory_space<vmem>>, vector<4x128xf32>,
    %c0_1 = arith.constant 0 : index
    %c384 = arith.constant 384 : index
    %2 = vector.load %arg6[%c0_1, %c384] : memref<4x512xf32, #tpu.memory_space<vmem>>, vector<4x128xf32>
    tpu.vector_store %arg6[%c0_1, %c384], %0 {strides = array<i32>} : memref<4x512xf32, #tpu.memory_space<vmem>>, vector<4x128xf32>,
    %c0_2 = arith.constant 0 : index
    %c0_3 = arith.constant 0 : index
    %c0_4 = arith.constant 0 : index
    %3 = vector.load %arg1[%c0_2, %c0_3, %c0_4] : memref<1x4x256xf32, #tpu.memory_space<vmem>>, vector<1x4x256xf32>
    %4 = vector.shape_cast %3 : vector<1x4x256xf32> to vector<4x256xf32>
    %c0_5 = arith.constant 0 : index
    %c128 = arith.constant 128 : index
    %5 = vector.load %arg6[%c0_5, %c128] : memref<4x512xf32, #tpu.memory_space<vmem>>, vector<4x256xf32>
    tpu.vector_store %arg6[%c0_5, %c128], %4 {strides = array<i32>} : memref<4x512xf32, #tpu.memory_space<vmem>>, vector<4x256xf32>,
    %6 = tpu.iota {dimensions = array<i32: 1>} : vector<4x256xi32>
    %c16_i32 = arith.constant 16 : i32
    %c0_i32 = arith.constant 0 : i32
    %7 = arith.cmpi eq, %c16_i32, %c0_i32 : i32
    %c1_i32 = arith.constant 1 : i32
    %8 = arith.select %7, %c1_i32, %c16_i32 : i32
    %9 = vector.broadcast %8 : i32 to vector<4x256xi32>
    %10 = arith.remsi %6, %9 : vector<4x256xi32>
    %c0_i32_6 = arith.constant 0 : i32
    %11 = vector.broadcast %c0_i32_6 : i32 to vector<4x256xi32>
    %12 = arith.cmpi ne, %10, %11 : vector<4x256xi32>
    %c0_i32_7 = arith.constant 0 : i32
    %13 = vector.broadcast %c0_i32_7 : i32 to vector<4x256xi32>
    %14 = arith.cmpi slt, %10, %13 : vector<4x256xi32>
    %c0_i32_8 = arith.constant 0 : i32
    %15 = arith.cmpi slt, %8, %c0_i32_8 : i32
    %16 = vector.broadcast %15 : i1 to vector<4x256xi1>
    %17 = vector.broadcast %16 : vector<4x256xi1> to vector<4x256xi1>
    %18 = arith.xori %14, %17 : vector<4x256xi1>
    %19 = arith.andi %18, %12 : vector<4x256xi1>
    %20 = vector.broadcast %8 : i32 to vector<4x256xi32>
    %21 = arith.addi %10, %20 : vector<4x256xi32>
    %22 = arith.select %19, %21, %10 : vector<4x256xi1>, vector<4x256xi32>
    %c0_i32_9 = arith.constant 0 : i32
    %23 = vector.broadcast %c0_i32_9 : i32 to vector<4x256xi32>
    %24 = arith.cmpi sgt, %22, %23 : vector<4x256xi32>
    %c15_i32 = arith.constant 15 : i32
    %25 = vector.broadcast %c15_i32 : i32 to vector<4x256xi32>
    %26 = arith.cmpi slt, %22, %25 : vector<4x256xi32>
    %c0_10 = arith.constant 0 : index
    %c0_11 = arith.constant 0 : index
    %27 = vector.load %arg2[%c0_10, %c0_11] : memref<36x36xf32, #tpu.memory_space<vmem>>, vector<36x36xf32>
    %c0_12 = arith.constant 0 : index
    %c0_13 = arith.constant 0 : index
    %28 = vector.load %arg3[%c0_12, %c0_13] : memref<36x1xf32, #tpu.memory_space<vmem>>, vector<36x1xf32>
    %c0_14 = arith.constant 0 : index
    %c111 = arith.constant 111 : index
    %29 = vector.load %arg6[%c0_14, %c111] : memref<4x512xf32, #tpu.memory_space<vmem>>, vector<4x256xf32>
    %cst_15 = arith.constant 0.000000e+00 : f32
    %30 = vector.broadcast %cst_15 : f32 to vector<4x256xf32>
    %31 = arith.select %24, %29, %30 : vector<4x256xi1>, vector<4x256xf32>
    %32 = vector.extract_strided_slice %27 {offsets = [0, 0], sizes = [36, 4], strides = [1, 1]} : vector<36x36xf32> to vector<36x4xf32>
    %cst_16 = arith.constant dense<0.000000e+00> : vector<36x256xf32>
    %33 = tpu.matmul %32, %31, %cst_16 {dimension_numbers = #tpu.dot_dimension_numbers<[1], [0], [0], [1], [0, 0, 1, 1], [], []>} : vector<36x4xf32>, vector<4x256xf32>, vector<36x256xf32> -> vector<36x256xf32>
    %c0_17 = arith.constant 0 : index
    %c112 = arith.constant 112 : index
    %34 = vector.load %arg6[%c0_17, %c112] : memref<4x512xf32, #tpu.memory_space<vmem>>, vector<4x256xf32>
    %35 = vector.extract_strided_slice %27 {offsets = [0, 4], sizes = [36, 4], strides = [1, 1]} : vector<36x36xf32> to vector<36x4xf32>
    %cst_18 = arith.constant dense<0.000000e+00> : vector<36x256xf32>
    %36 = tpu.matmul %35, %34, %cst_18 {dimension_numbers = #tpu.dot_dimension_numbers<[1], [0], [0], [1], [0, 0, 1, 1], [], []>} : vector<36x4xf32>, vector<4x256xf32>, vector<36x256xf32> -> vector<36x256xf32>
    %37 = arith.addf %33, %36 : vector<36x256xf32>
    %c0_19 = arith.constant 0 : index
    %c113 = arith.constant 113 : index
    %38 = vector.load %arg6[%c0_19, %c113] : memref<4x512xf32, #tpu.memory_space<vmem>>, vector<4x256xf32>
    %cst_20 = arith.constant 0.000000e+00 : f32
    %39 = vector.broadcast %cst_20 : f32 to vector<4x256xf32>
    %40 = arith.select %26, %38, %39 : vector<4x256xi1>, vector<4x256xf32>
    %41 = vector.extract_strided_slice %27 {offsets = [0, 8], sizes = [36, 4], strides = [1, 1]} : vector<36x36xf32> to vector<36x4xf32>
    %cst_21 = arith.constant dense<0.000000e+00> : vector<36x256xf32>
    %42 = tpu.matmul %41, %40, %cst_21 {dimension_numbers = #tpu.dot_dimension_numbers<[1], [0], [0], [1], [0, 0, 1, 1], [], []>} : vector<36x4xf32>, vector<4x256xf32>, vector<36x256xf32> -> vector<36x256xf32>
    %43 = arith.addf %37, %42 : vector<36x256xf32>
    %c0_22 = arith.constant 0 : index
    %c127 = arith.constant 127 : index
    %44 = vector.load %arg6[%c0_22, %c127] : memref<4x512xf32, #tpu.memory_space<vmem>>, vector<4x256xf32>
    %cst_23 = arith.constant 0.000000e+00 : f32
    %45 = vector.broadcast %cst_23 : f32 to vector<4x256xf32>
    %46 = arith.select %24, %44, %45 : vector<4x256xi1>, vector<4x256xf32>
    %47 = vector.extract_strided_slice %27 {offsets = [0, 12], sizes = [36, 4], strides = [1, 1]} : vector<36x36xf32> to vector<36x4xf32>
    %cst_24 = arith.constant dense<0.000000e+00> : vector<36x256xf32>
    %48 = tpu.matmul %47, %46, %cst_24 {dimension_numbers = #tpu.dot_dimension_numbers<[1], [0], [0], [1], [0, 0, 1, 1], [], []>} : vector<36x4xf32>, vector<4x256xf32>, vector<36x256xf32> -> vector<36x256xf32>
    %49 = arith.addf %43, %48 : vector<36x256xf32>
    %c0_25 = arith.constant 0 : index
    %c128_26 = arith.constant 128 : index
    %50 = vector.load %arg6[%c0_25, %c128_26] : memref<4x512xf32, #tpu.memory_space<vmem>>, vector<4x256xf32>
    %51 = vector.extract_strided_slice %27 {offsets = [0, 16], sizes = [36, 4], strides = [1, 1]} : vector<36x36xf32> to vector<36x4xf32>
    %cst_27 = arith.constant dense<0.000000e+00> : vector<36x256xf32>
    %52 = tpu.matmul %51, %50, %cst_27 {dimension_numbers = #tpu.dot_dimension_numbers<[1], [0], [0], [1], [0, 0, 1, 1], [], []>} : vector<36x4xf32>, vector<4x256xf32>, vector<36x256xf32> -> vector<36x256xf32>
    %53 = arith.addf %49, %52 : vector<36x256xf32>
    %c0_28 = arith.constant 0 : index
    %c129 = arith.constant 129 : index
    %54 = vector.load %arg6[%c0_28, %c129] : memref<4x512xf32, #tpu.memory_space<vmem>>, vector<4x256xf32>
    %cst_29 = arith.constant 0.000000e+00 : f32
    %55 = vector.broadcast %cst_29 : f32 to vector<4x256xf32>
    %56 = arith.select %26, %54, %55 : vector<4x256xi1>, vector<4x256xf32>
    %57 = vector.extract_strided_slice %27 {offsets = [0, 20], sizes = [36, 4], strides = [1, 1]} : vector<36x36xf32> to vector<36x4xf32>
    %cst_30 = arith.constant dense<0.000000e+00> : vector<36x256xf32>
    %58 = tpu.matmul %57, %56, %cst_30 {dimension_numbers = #tpu.dot_dimension_numbers<[1], [0], [0], [1], [0, 0, 1, 1], [], []>} : vector<36x4xf32>, vector<4x256xf32>, vector<36x256xf32> -> vector<36x256xf32>
    %59 = arith.addf %53, %58 : vector<36x256xf32>
    %c0_31 = arith.constant 0 : index
    %c143 = arith.constant 143 : index
    %60 = vector.load %arg6[%c0_31, %c143] : memref<4x512xf32, #tpu.memory_space<vmem>>, vector<4x256xf32>
    %cst_32 = arith.constant 0.000000e+00 : f32
    %61 = vector.broadcast %cst_32 : f32 to vector<4x256xf32>
    %62 = arith.select %24, %60, %61 : vector<4x256xi1>, vector<4x256xf32>
    %63 = vector.extract_strided_slice %27 {offsets = [0, 24], sizes = [36, 4], strides = [1, 1]} : vector<36x36xf32> to vector<36x4xf32>
    %cst_33 = arith.constant dense<0.000000e+00> : vector<36x256xf32>
    %64 = tpu.matmul %63, %62, %cst_33 {dimension_numbers = #tpu.dot_dimension_numbers<[1], [0], [0], [1], [0, 0, 1, 1], [], []>} : vector<36x4xf32>, vector<4x256xf32>, vector<36x256xf32> -> vector<36x256xf32>
    %65 = arith.addf %59, %64 : vector<36x256xf32>
    %c0_34 = arith.constant 0 : index
    %c144 = arith.constant 144 : index
    %66 = vector.load %arg6[%c0_34, %c144] : memref<4x512xf32, #tpu.memory_space<vmem>>, vector<4x256xf32>
    %67 = vector.extract_strided_slice %27 {offsets = [0, 28], sizes = [36, 4], strides = [1, 1]} : vector<36x36xf32> to vector<36x4xf32>
    %cst_35 = arith.constant dense<0.000000e+00> : vector<36x256xf32>
    %68 = tpu.matmul %67, %66, %cst_35 {dimension_numbers = #tpu.dot_dimension_numbers<[1], [0], [0], [1], [0, 0, 1, 1], [], []>} : vector<36x4xf32>, vector<4x256xf32>, vector<36x256xf32> -> vector<36x256xf32>
    %69 = arith.addf %65, %68 : vector<36x256xf32>
    %c0_36 = arith.constant 0 : index
    %c145 = arith.constant 145 : index
    %70 = vector.load %arg6[%c0_36, %c145] : memref<4x512xf32, #tpu.memory_space<vmem>>, vector<4x256xf32>
    %cst_37 = arith.constant 0.000000e+00 : f32
    %71 = vector.broadcast %cst_37 : f32 to vector<4x256xf32>
    %72 = arith.select %26, %70, %71 : vector<4x256xi1>, vector<4x256xf32>
    %73 = vector.extract_strided_slice %27 {offsets = [0, 32], sizes = [36, 4], strides = [1, 1]} : vector<36x36xf32> to vector<36x4xf32>
    %cst_38 = arith.constant dense<0.000000e+00> : vector<36x256xf32>
    %74 = tpu.matmul %73, %72, %cst_38 {dimension_numbers = #tpu.dot_dimension_numbers<[1], [0], [0], [1], [0, 0, 1, 1], [], []>} : vector<36x4xf32>, vector<4x256xf32>, vector<36x256xf32> -> vector<36x256xf32>
    %75 = arith.addf %69, %74 : vector<36x256xf32>
    %76 = vector.broadcast %28 : vector<36x1xf32> to vector<36x256xf32>
    %77 = arith.addf %75, %76 : vector<36x256xf32>
    %78 = vector.extract_strided_slice %77 {offsets = [0, 0], sizes = [18, 256], strides = [1, 1]} : vector<36x256xf32> to vector<18x256xf32>
    %79 = vector.shape_cast %78 : vector<18x256xf32> to vector<1x18x256xf32>
    %c0_39 = arith.constant 0 : index
    %c0_40 = arith.constant 0 : index
    %c0_41 = arith.constant 0 : index
    %80 = vector.load %arg4[%c0_39, %c0_40, %c0_41] : memref<1x18x256xf32, #tpu.memory_space<vmem>>, vector<1x18x256xf32>
    tpu.vector_store %arg4[%c0_39, %c0_40, %c0_41], %79 {strides = array<i32>} : memref<1x18x256xf32, #tpu.memory_space<vmem>>, vector<1x18x256xf32>,
    %81 = vector.extract_strided_slice %77 {offsets = [24, 0], sizes = [12, 256], strides = [1, 1]} : vector<36x256xf32> to vector<12x256xf32>
    %82 = vector.shape_cast %81 : vector<12x256xf32> to vector<1x12x256xf32>
    %c0_42 = arith.constant 0 : index
    %c0_43 = arith.constant 0 : index
    %c0_44 = arith.constant 0 : index
    %83 = vector.load %arg5[%c0_42, %c0_43, %c0_44] : memref<1x12x256xf32, #tpu.memory_space<vmem>>, vector<1x12x256xf32>
    tpu.vector_store %arg5[%c0_42, %c0_43, %c0_44], %82 {strides = array<i32>} : memref<1x12x256xf32, #tpu.memory_space<vmem>>, vector<1x12x256xf32>,
    return
  }
  func.func @transform_0(%arg0: i32) -> (i32, i32, i32) {
    %c0_i32 = arith.constant 0 : i32
    %c0_i32_0 = arith.constant 0 : i32
    %c0_i32_1 = arith.constant 0 : i32
    return %arg0, %c0_i32, %c0_i32_0 : i32, i32, i32
  }
  func.func @transform_1(%arg0: i32) -> (i32, i32) {
    %c0_i32 = arith.constant 0 : i32
    %c0_i32_0 = arith.constant 0 : i32
    %c0_i32_1 = arith.constant 0 : i32
    return %c0_i32, %c0_i32_0 : i32, i32
  }
  func.func @transform_2(%arg0: i32) -> (i32, i32) {
    %c0_i32 = arith.constant 0 : i32
    %c0_i32_0 = arith.constant 0 : i32
    %c0_i32_1 = arith.constant 0 : i32
    return %c0_i32, %c0_i32_0 : i32, i32
  }
  func.func @transform_3(%arg0: i32) -> (i32, i32, i32) {
    %c0_i32 = arith.constant 0 : i32
    %c0_i32_0 = arith.constant 0 : i32
    %c0_i32_1 = arith.constant 0 : i32
    return %arg0, %c0_i32, %c0_i32_0 : i32, i32, i32
  }
  func.func @transform_4(%arg0: i32) -> (i32, i32, i32) {
    %c0_i32 = arith.constant 0 : i32
    %c0_i32_0 = arith.constant 0 : i32
    %c0_i32_1 = arith.constant 0 : i32
    return %arg0, %c0_i32, %c0_i32_0 : i32, i32, i32
  }
}

</mosaic_0001>

<bundles_post_ra>
// kernel: tpu_custom_call.1
= control target key start
LH: loop header
LB: loop body
LE: loop exit
PB: predicated region body
PF: predicated region fallthrough
CT: control target
= control target key end

     0   :  { %10 = vsyncpa [#allocation4], 0  ;;  %s2457_s0 = inlined_call_operand.hbm [shape: f32[2,4,256], index: 0, kind: input, shape index: {}]   ;;  %s2458_s1 = inlined_call_operand.vmem [shape: f32[36,36], index: 1, kind: input, shape index: {}]   ;;  %s2459_s2 = inlined_call_operand.vmem [shape: f32[36,1], index: 2, kind: input, shape index: {}]   ;;  %s2460_s3 = inlined_call_operand.vmem [shape: f32[2,18,256], index: 3, kind: output, shape index: {0}]   ;;  %s2461_s4 = inlined_call_operand.vmem [shape: f32[2,12,256], index: 4, kind: output, shape index: {1}]  }
   0x1   :  { %12 = vsyncpa [#allocation4 + $0x1], 0  ;;  %s1951_s15 = smov 0   ;;  %s1953_s16 = smov 0  }
   0x2   :  { %s1955_s17 = smov 0   ;;  %s1957_s18 = smov 0  }
   0x3 LB: > { %s1970_s19 = sadd.s32 4294967295, %s1906_s18   ;;  %s1973_s20 = sadd.s32 1, %s1906_s18   ;;  %s1906_s18 = sphi %s1957_s18, %s2503_s18   ;;  %s1902_s17 = sphi %s1955_s17, %s2502_s17   ;;  %s1898_s16 = sphi %s1953_s16, %s2501_s16   ;;  %s1894_s15 = sphi %s1951_s15, %s2500_s15  }
   0x4   : > { %s22_s21 = ssub.s32 %s1906_s18, %s1973_s20  ;;  %s25_s22 = sadd.s32 1, %s1902_s17 }
   0x5   : > { %p23_p0 = scmp.eq.s32.totalorder %s22_s21, 0  ;;  %p32_p1 = scmp.ne.s32.totalorder %s1902_s17, %s1898_s16 }
   0x6   : > { %p33_p2 = scmp.eq.s32.totalorder %s1906_s18, 0  ;;  %p38_p3 = scmp.ne.s32.totalorder %s1898_s16, %s1894_s15 }
   0x7   : > { %s1983_s23 = scalar_select %p23_p0, %s1902_s17, %s25_s22  }
   0x8   : > { %p34_p4 = por %p33_p2, %p32_p1  ;;  %p39_p5 = scmp.eq.s32.totalorder %s1970_s19, 0 }
   0x9   : > { %p1790_p6 = scmp.lt.s32.totalorder %s1906_s18, 2  ;;  %s162_s25 = sand.u32 1, %s1902_s17  }
   0xa   : > { %p1987_p7 = por %p39_p5, %p38_p3  ;;  %s1706_s26 = sshll.u32 %s162_s25, 3 }
   0xb   : > { %s1779_s27 = sshll.u32 %s1906_s18, 7  ;;  %s166_s5 = scalar_lea.vmem [#allocation3], %s1706_s26 }
   0xc   : > { %s2463_s24 = scalar_select %p1987_p7, 1, 0 }
   0xd   : > { %s1996_s30 = scalar_lea.hbm %s2457_s0, %s1779_s27  ;;  %s174_s6 = sshll.u32 %s166_s5, 4  ;;  %s1998_s6 = int_to_ptr.vmem [resolvable:$true] %s174_s6 }
   0xe   : > { %p2000_p8 = pnand %p1790_p6, %p34_p4  ;;  %s163_s8 = scalar_lea.sflag [#allocation4], %s162_s25 }
   0xf   : > { %s1844_s9 = scalar_lea.hbm %s1996_s30, 128  ;;  %s1849_s12 = scalar_lea.hbm %s2457_s0, 256 }
  0x10   : > { %p1845_p11 = scmp.ne.s32.totalorder %s1996_s30, %s1844_s9  ;;  %p1846_p12 = pneg %p2000_p8 }
  0x11   : > { %p1850_p1 = scmp.lt.s32.totalorder %s1996_s30, %s2457_s0  ;;  %p1851_p2 = scmp.lt.s32.totalorder %s1849_s12, %s1844_s9 }
  0x12   : > { %p1847_p13 = pnand %p1846_p12, %p1845_p11 }
  0x13   : > { %p1852_p3 = por %p1851_p2, %p1850_p1 }
  0x14   : > { %p1848_p0 = pneg %p1847_p13 }
  0x16   : > { %p1853_p4 = pnand %p1852_p3, %p1848_p0 }
  0x18   : > { %1856 = shalt.err (!%p1853_p4)
}
  0x19   : > { %s1857_s15 = scalar_lea.vmem %s1998_s6, 128  ;;  %s1908_s21 = smov [#allocation3]  }
  0x1a   : > { %p1858_p5 = scmp.ne.s32.totalorder %s1998_s6, %s1857_s15  ;;  %s1862_s22 = sshll.u32 %s1908_s21, 4  ;;  %s1863_s22 = int_to_ptr.vmem [resolvable:$false] %s1862_s22 }
  0x1b   : > { %s1864_s25 = scalar_lea.vmem %s1863_s22, 256  ;;  %p1865_p13 = scmp.lt.s32.totalorder %s1998_s6, %s1863_s22 }
  0x1c   : > { %p1860_p6 = pnand %p1858_p5, %p1846_p12  ;;  %p1866_p9 = scmp.lt.s32.totalorder %s1864_s25, %s1857_s15 }
  0x1e   : > { %p1861_p11 = pneg %p1860_p6  ;;  %p1867_p10 = por %p1866_p9, %p1865_p13 }
  0x20   : > { %p1868_p7 = pnand %p1867_p10, %p1861_p11 }
  0x22   : > { %1871 = shalt.err (!%p1868_p7)
}
  0x23   : > { %1789 = dma.hbm_to_vmem [thread:$0]  (!%p2000_p8), %s1996_s30, 128, %s1998_s6, %s163_s8  }
  0x24   : > { %p2465_p0 = scmp.lt.s32.totalorder %s1906_s18, 3  ;;  %p2466_p1 = scmp.ge.s32.totalorder %s1906_s18, 1 }
  0x26   : > { %p180_p12 = pnand %p2466_p1, %p2465_p0 }
  0x28   : > { %183 = sbr.rel (%p180_p12) target bundleno = 492 (0x1ec), region = 32 }
  0x2d   : > { %s185_s26 = sand.u32 1, %s1898_s16   ;;  %p2467_p9 = scmp.ne.s32.totalorder %s2463_s24, 0 }
  0x2e   : > { %s1710_s27 = sshll.u32 %s185_s26, 3  ;;  %s186_s28 = scalar_lea.sflag [#allocation4], %s185_s26 }
  0x2f   : > { %s189_s29 = scalar_lea.vmem [#allocation3], %s1710_s27 }
  0x30   : > { %1889 = dma.done.wait (%p2467_p9), %s186_s28, 128  }
  0x31   : > { %1891 = vsyncadd (%p2467_p9), %s186_s28, 4294967168  ;;  %v1909_v0 = vmov 0.0   ;;  %v2040_v1 = vld [vmem:[%s2458_s1 + $0x18] sm:$0xff]  ;;  %v2045_v2 = vld [vmem:[%s2458_s1] sm:$0xff]  ;;  %s1910_s24 = smov 124   ;;  %s1911_s11 = smov 16   ;;  %v233_v19 = vlaneseq }
  0x32   : > { %229 = vst [vmem:[#allocation2] sm:$0xf] %v1909_v0  ;;  %230 = vst [vmem:[#allocation2 + $0xc] sm:$0xf] %v1909_v0  ;;  %396 = vmatprep.mubr.f32.mxu0 %v1909_v0  ;;  %414 = vmatprep.mubr.f32.mxu1 %v1909_v0  ;;  %v2049_v3 = vld [vmem:[%s189_s29] sm:$0xff]  ;;  %v2059_v5 = vld [vmem:[%s2458_s1 + $0x8] sm:$0xff] }
  0x33   : > { %303 = vrot.lane.b32.xlu0 %v2040_v1, %s1910_s24  ;;  %297 = vrot.lane.b32.xlu1 %v2045_v2, %s1910_s24  ;;  %v2054_v4 = vld [vmem:[%s2458_s1 + $0x20] sm:$0xf]  ;;  %232 = vst [vmem:[#allocation2 + $0x4] sm:$0xff] %v2049_v3  ;;  %s1912_s12 = smov 17   ;;  %v2067_v9 = vld [vmem:[%s2458_s1 + $0x10] sm:$0xff]  ;;  %s1913_s15 = smov 15   ;;  %v2089_v12 = vcombine.high %v2049_v3, %v2049_v3 }
  0x34   : > { %s1914_s21 = smov 120   ;;  %s1915_s22 = smov 1   ;;  %v1925_v20 = vmov 0   ;;  %v234_v23 = vand.u32 127, %v233_v19  ;;  %vm313_vm0 = vcmask 130048   ;;  %vm327_vm1 = vcmask 1043456  }
  0x35   : > { %s1916_s25 = smov 112   ;;  %s1917_s26 = smov 116   ;;  %1840 = vset.pattern.permute.xlu0 %v1925_v20  ;;  %1841 = vset.pattern.permute.xlu1 %v1925_v20  ;;  %vm316_vm2 = vcmask 31744   ;;  %vm285_vm3 = vcmask 138240   ;;  %v269_v35 = vld [vmem:[%s2459_s2] sm:$0xff]  ;;  %v270_v36 = vld [vmem:[%s2459_s2 + $0x8] sm:$0xff] }
  0x36   : > { %s1918_s27 = smov 127   ;;  %s1919_s28 = smov 113   ;;  %v235_v24 = vadd.s32 128, %v234_v23  ;;  %v240_v27 = vand.u32 15, %v234_v23  ;;  %v271_v43 = vld [vmem:[%s2459_s2 + $0x10] sm:$0xff]  ;;  %v272_v46 = vld [vmem:[%s2459_s2 + $0x18] sm:$0xff] }
  0x37   : > { %305 = vrot.lane.b32.xlu0 %v2054_v4, %s1910_s24  ;;  %299 = vrot.lane.b32.xlu1 %v2059_v5, %s1910_s24  ;;  %s1920_s29 = smov 104   ;;  %s1921_s18 = smov 108   ;;  %vm549_vm6 = vcmask 121856   ;;  %v273_v49 = vld [vmem:[%s2459_s2 + $0x20] sm:$0xf]  ;;  %vm698_vm9 = vcmask 7168  }
  0x38   : > { %s1922_s30 = smov 111   ;;  %s1923_s5 = smov 100   ;;  %v247_v28 = vand.u32 15, %v235_v24  ;;  %vm2129_vm4 = vcmp.gt.s32.totalorder %v240_v27, 0  ;;  %vm2163_vm7 = vcmp.lt.s32.totalorder %v240_v27, 15  ;;  %vm979_vm10 = vcmask 1039360  }
  0x39   : > { %v969_v13 = vld [vmem:[#allocation2 + $0xc] sm:$0xf]  ;;  %s1924_s6 = smov 96   ;;  %vm1128_vm11 = vcmask 924672   ;;  %vm1287_vm12 = vcmask 916480   ;;  %vm1420_vm13 = vcmask 908288  }
  0x3a   : > { %v275_v6 = vld [vmem:[#allocation2 + $0x8] sm:$0xf]  ;;  %v274_v7 = vld [vmem:[#allocation2] sm:$0xff]  ;;  %v1118_v14 = vld [vmem:[#allocation2 + $0xc] sm:$0xf]  ;;  %vm2133_vm5 = vcmp.gt.s32.totalorder %v247_v28, 0 }
  0x3b   : > { %311 = vrot.lane.b32.xlu0 %v275_v6, %s1911_s11  ;;  %307 = vrot.lane.b32.xlu1 %v274_v7, %s1911_s11  ;;  %v278_v8 = vcombine.high %v274_v7, %v274_v7  ;;  %v539_v10 = vld [vmem:[#allocation2 + $0x8] sm:$0xf]  ;;  %v1267_v15 = vld [vmem:[#allocation2 + $0xc] sm:$0xf]  ;;  %vm2167_vm8 = vcmp.lt.s32.totalorder %v247_v28, 15  ;;  %p219_p7 = scmp.lt.s32.totalorder %s1970_s19, 1 }
  0x3c   : > { %v688_v11 = vld [vmem:[#allocation2 + $0x8] sm:$0xf]  ;;  %v1410_v16 = vld [vmem:[#allocation2 + $0xc] sm:$0xf] }
  0x3d   : > { %s2505_s19 = smov (!%p219_p7, %s1970_s19), 1 }
  0x3f   : > { %283 = vrot.lane.b32.xlu1 %v275_v6, %s1912_s12  ;;  %309 = vrot.lane.b32.xlu0 %v278_v8, %s1911_s11 }
  0x43   : > { %279 = vrot.lane.b32.xlu1 %v274_v7, %s1912_s12  ;;  %281 = vrot.lane.b32.xlu0 %v278_v8, %s1912_s12 }
  0x47   : > { %545 = vrot.lane.b32.xlu1 %v278_v8, %s1913_s15  ;;  %301 = vrot.lane.b32.xlu0 %v2067_v9, %s1910_s24 }
  0x4b   : > { %543 = vrot.lane.b32.xlu1 %v274_v7, %s1913_s15  ;;  %547 = vrot.lane.b32.xlu0 %v539_v10, %s1913_s15 }
  0x4f   : > { %558 = vrot.lane.b32.xlu1 %v2059_v5, %s1914_s21  ;;  %556 = vrot.lane.b32.xlu0 %v2045_v2, %s1914_s21 }
  0x53   : > { %562 = vrot.lane.b32.xlu1 %v2040_v1, %s1914_s21  ;;  %560 = vrot.lane.b32.xlu0 %v2067_v9, %s1914_s21 }
  0x57   : > { %696 = vrot.lane.b32.xlu1 %v688_v11, %s1915_s22  ;;  %694 = vrot.lane.b32.xlu0 %v278_v8, %s1915_s22 }
  0x5b   : > { %564 = vrot.lane.b32.xlu1 %v2054_v4, %s1914_s21  ;;  %692 = vrot.lane.b32.xlu0 %v274_v7, %s1915_s22  ;;  %s1783_s21 = smul.u32 48, %s2505_s19 }
  0x5f   : > { %837 = vrot.lane.b32.xlu1 %v2045_v2, %s1916_s25  ;;  %705 = vrot.lane.b32.xlu0 %v2045_v2, %s1917_s26 }
  0x63   : > { %839 = vrot.lane.b32.xlu1 %v2059_v5, %s1916_s25  ;;  %707 = vrot.lane.b32.xlu0 %v2059_v5, %s1917_s26 }
  0x67   : > { %841 = vrot.lane.b32.xlu1 %v2067_v9, %s1916_s25  ;;  %709 = vrot.lane.b32.xlu0 %v2067_v9, %s1917_s26 }
  0x6b   : > { %843 = vrot.lane.b32.xlu1 %v2040_v1, %s1916_s25  ;;  %711 = vrot.lane.b32.xlu0 %v2040_v1, %s1917_s26 }
  0x6f   : > { %975 = vrot.lane.b32.xlu1 %v2089_v12, %s1918_s27  ;;  %713 = vrot.lane.b32.xlu0 %v2054_v4, %s1917_s26  ;;  %s2412_s26 = scalar_lea.vmem %s2460_s3, %s1783_s21 }
  0x73   : > { %973 = vrot.lane.b32.xlu1 %v2049_v3, %s1918_s27  ;;  %977 = vrot.lane.b32.xlu0 %v969_v13, %s1918_s27  ;;  %s1780_s27 = sshll.u32 %s2505_s19, 5 }
  0x77   : > { %1124 = vrot.lane.b32.xlu1 %v2089_v12, %s1919_s28  ;;  %845 = vrot.lane.b32.xlu0 %v2054_v4, %s1916_s25 }
  0x7b   : > { %1122 = vrot.lane.b32.xlu1 %v2049_v3, %s1919_s28  ;;  %1126 = vrot.lane.b32.xlu0 %v1118_v14, %s1919_s28 }
  0x7f   : > { %1135 = vrot.lane.b32.xlu1 %v2045_v2, %s1920_s29  ;;  %986 = vrot.lane.b32.xlu0 %v2045_v2, %s1921_s18 }
  0x83   : > { %1137 = vrot.lane.b32.xlu1 %v2059_v5, %s1920_s29  ;;  %988 = vrot.lane.b32.xlu0 %v2059_v5, %s1921_s18 }
  0x87   : > { %1139 = vrot.lane.b32.xlu1 %v2067_v9, %s1920_s29  ;;  %990 = vrot.lane.b32.xlu0 %v2067_v9, %s1921_s18 }
  0x8b   : > { %1141 = vrot.lane.b32.xlu1 %v2040_v1, %s1920_s29  ;;  %992 = vrot.lane.b32.xlu0 %v2040_v1, %s1921_s18 }
  0x8f   : > { %1283 = vrot.lane.b32.xlu1 %v2089_v12, %s1916_s25  ;;  %994 = vrot.lane.b32.xlu0 %v2054_v4, %s1921_s18  ;;  %s228_s18 = scalar_lea.vmem %s2461_s4, %s1780_s27 }
  0x93   : > { %1143 = vrot.lane.b32.xlu1 %v2054_v4, %s1920_s29  ;;  %1285 = vrot.lane.b32.xlu0 %v1267_v15, %s1916_s25 }
  0x97   : > { %1416 = vrot.lane.b32.xlu1 %v2089_v12, %s1922_s30  ;;  %1281 = vrot.lane.b32.xlu0 %v2049_v3, %s1916_s25 }
  0x9b   : > { %1414 = vrot.lane.b32.xlu1 %v2049_v3, %s1922_s30  ;;  %1418 = vrot.lane.b32.xlu0 %v1410_v16, %s1922_s30 }
  0x9f   : > { %1268 = vrot.lane.b32.xlu0 %v2045_v2, %s1923_s5  ;;  %1427 = vrot.lane.b32.xlu1 %v2045_v2, %s1924_s6 }
  0xa3   : > { %1270 = vrot.lane.b32.xlu0 %v2059_v5, %s1923_s5  ;;  %1429 = vrot.lane.b32.xlu1 %v2059_v5, %s1924_s6 }
  0xa5   : > { %v304_v17 = vpop.permute.xlu0 %303  ;;  %v298_v18 = vpop.permute.xlu1 %297 }
  0xa7   : > { %1272 = vrot.lane.b32.xlu0 %v2067_v9, %s1923_s5  ;;  %1431 = vrot.lane.b32.xlu1 %v2067_v9, %s1924_s6 }
  0xa9   : > { %v306_v21 = vpop.permute.xlu0 %305  ;;  %v300_v22 = vpop.permute.xlu1 %299 }
  0xab   : > { %1274 = vrot.lane.b32.xlu0 %v2040_v1, %s1923_s5  ;;  %1433 = vrot.lane.b32.xlu1 %v2040_v1, %s1924_s6 }
  0xad   : > { %v312_v25 = vpop.permute.xlu0 %311  ;;  %v308_v26 = vpop.permute.xlu1 %307 }
  0xaf   : > { %1276 = vrot.lane.b32.xlu0 %v2054_v4, %s1923_s5  ;;  %1435 = vrot.lane.b32.xlu1 %v2054_v4, %s1924_s6 }
  0xb1   : > { %v284_v29 = vpop.permute.xlu1 %283  ;;  %v310_v30 = vpop.permute.xlu0 %309 }
  0xb2   : > { %v315_v31 = vsel %vm313_vm0, %v310_v30, %v312_v25  ;;  %v314_v32 = vsel %vm313_vm0, %v308_v26, %v310_v30 }
  0xb3   : > { %1714 = vmatprep.subr.msk.mxu0 %vm327_vm1, %v315_v31  ;;  %1781 = vmatprep.subr.msk.mxu1 %vm327_vm1, %v315_v31 }
  0xb4   : > { %1715 = vmatpush1.msk.msra.mxu0 %vm327_vm1, %v314_v32  ;;  %1782 = vmatpush1.msk.msra.mxu1 %vm327_vm1, %v314_v32 }
  0xb5   : > { %v280_v37 = vpop.permute.xlu1 %279  ;;  %1716 = vmatmul.mubr.msk.f32.vlgmr.msra.gmra.mxu0 %vm316_vm2, %v298_v18  ;;  %1719 = vmatmul.mubr.msk.f32.vlgmr.msra.gmra.mxu1 %vm316_vm2, %v304_v17  ;;  %v282_v38 = vpop.permute.xlu0 %281 }
  0xb6   : > { %v286_v39 = vsel %vm285_vm3, %v280_v37, %v282_v38  ;;  %v287_v40 = vsel %vm285_vm3, %v282_v38, %v284_v29  ;;  %402 = vmatprep.mubr.f32.mxu0 %v1909_v0  ;;  %420 = vmatprep.mubr.f32.mxu1 %v1909_v0 }
  0xb7   : > { %v290_v41 = vsel %vm2129_vm4, %v286_v39, 0.0  ;;  %v291_v42 = vsel %vm2133_vm5, %v287_v40, 0.0  ;;  %1560 = vperm.xlu0 %1840, %v269_v35   ;;  %1565 = vperm.xlu1 %1841, %v270_v36  }
  0xb8   : > { %1721 = vmatprep.subr.msk.mxu1 %vm327_vm1, %v291_v42 }
  0xb9   : > { %v546_v44 = vpop.permute.xlu1 %545  ;;  %1717 = vmatmul.mubr.msk.f32.gmra.mxu0 %vm316_vm2, %v300_v22  ;;  %1720 = vmatmul.mubr.msk.f32.gmra.mxu1 %vm316_vm2, %v306_v21  ;;  %v302_v45 = vpop.permute.xlu0 %301 }
  0xba   : > { %1722 = vmatpush1.msk.msra.mxu1 %vm327_vm1, %v290_v41  ;;  %408 = vmatprep.mubr.f32.mxu0 %v1909_v0 }
  0xbb   : > { %507 = vmatprep.mubr.f32.mxu1 %v1909_v0  ;;  %1570 = vperm.xlu1 %1841, %v271_v43  }
  0xbc   : > { %1575 = vperm.xlu0 %1840, %v272_v46  }
  0xbd   : > { %v544_v50 = vpop.permute.xlu1 %543  ;;  %1718 = vmatmul.mubr.msk.f32.gmra.mxu0 %vm316_vm2, %v302_v45  ;;  %1723 = vmatmul.mubr.msk.f32.vlgmr.msra.gmra.mxu1 %vm316_vm2, %v2045_v2  ;;  %v548_v51 = vpop.permute.xlu0 %547 }
  0xbe   : > { %v550_v52 = vsel %vm549_vm6, %v544_v50, %v546_v44  ;;  %v551_v53 = vsel %vm549_vm6, %v546_v44, %v548_v51  ;;  %513 = vmatprep.mubr.f32.mxu1 %v1909_v0  ;;  %646 = vmatprep.mubr.f32.mxu0 %v1909_v0 }
  0xbf   : > { %v554_v54 = vsel %vm2163_vm7, %v550_v52, 0.0  ;;  %v555_v55 = vsel %vm2167_vm8, %v551_v53, 0.0  ;;  %1580 = vperm.xlu1 %1841, %v273_v49  }
  0xc0   : > { %1728 = vmatprep.subr.msk.mxu0 %vm327_vm1, %v555_v55 }
  0xc1   : > { %v559_v56 = vpop.permute.xlu1 %558  ;;  %1724 = vmatmul.mubr.msk.f32.gmra.mxu1 %vm316_vm2, %v2059_v5  ;;  %1729 = vmatpush1.msk.msra.mxu0 %vm327_vm1, %v554_v54  ;;  %v557_v57 = vpop.permute.xlu0 %556 }
  0xc2   : > { %1730 = vmatmul.mubr.msk.f32.vlgmr.msra.gmra.mxu0 %vm316_vm2, %v557_v57  ;;  %519 = vmatprep.mubr.f32.mxu1 %v1909_v0 }
  0xc3   : > { %652 = vmatprep.mubr.f32.mxu0 %v1909_v0  ;;  %1742 = vmatprep.subr.msk.mxu0 %vm327_vm1, %v2089_v12 }
  0xc4   : > { %1743 = vmatpush1.msk.msra.mxu0 %vm327_vm1, %v2049_v3 }
  0xc5   : > { %v563_v58 = vpop.permute.xlu1 %562  ;;  %1725 = vmatmul.mubr.msk.f32.gmra.mxu1 %vm316_vm2, %v2067_v9  ;;  %v561_v59 = vpop.permute.xlu0 %560 }
  0xc6   : > { %1731 = vmatmul.mubr.msk.f32.gmra.mxu0 %vm316_vm2, %v559_v56  ;;  %525 = vmatprep.mubr.f32.mxu1 %v1909_v0 }
  0xc7   : > { %658 = vmatprep.mubr.f32.mxu0 %v1909_v0 }
  0xc9   : > { %v697_v60 = vpop.permute.xlu1 %696  ;;  %1726 = vmatmul.mubr.msk.f32.gmra.mxu1 %vm316_vm2, %v2040_v1  ;;  %v695_v61 = vpop.permute.xlu0 %694 }
  0xca   : > { %v700_v62 = vsel %vm698_vm9, %v695_v61, %v697_v60  ;;  %1732 = vmatmul.mubr.msk.f32.gmra.mxu0 %vm316_vm2, %v561_v59  ;;  %531 = vmatprep.mubr.f32.mxu1 %v1909_v0 }
  0xcb   : > { %v704_v63 = vsel %vm2133_vm5, %v700_v62, 0.0  ;;  %664 = vmatprep.mubr.f32.mxu0 %v1909_v0 }
  0xcc   : > { %1735 = vmatprep.subr.msk.mxu1 %vm327_vm1, %v704_v63 }
  0xcd   : > { %v565_v2 = vpop.permute.xlu1 %564  ;;  %1727 = vmatmul.mubr.msk.f32.gmra.mxu1 %vm316_vm2, %v2054_v4  ;;  %v693_v3 = vpop.permute.xlu0 %692 }
  0xce   : > { %v699_v5 = vsel %vm698_vm9, %v693_v3, %v695_v61  ;;  %1733 = vmatmul.mubr.msk.f32.gmra.mxu0 %vm316_vm2, %v563_v58  ;;  %795 = vmatprep.mubr.f32.mxu1 %v1909_v0 }
  0xcf   : > { %v703_v1 = vsel %vm2129_vm4, %v699_v5, 0.0  ;;  %670 = vmatprep.mubr.f32.mxu0 %v1909_v0 }
  0xd0   : > { %1736 = vmatpush1.msk.msra.mxu1 %vm327_vm1, %v703_v1 }
  0xd1   : > { %v838_v6 = vpop.permute.xlu1 %837  ;;  %v706_v7 = vpop.permute.xlu0 %705 }
  0xd2   : > { %1734 = vmatmul.mubr.msk.f32.gmra.mxu0 %vm316_vm2, %v565_v2  ;;  %1737 = vmatmul.mubr.msk.f32.vlgmr.msra.gmra.mxu1 %vm316_vm2, %v706_v7 }
  0xd3   : > { %801 = vmatprep.mubr.f32.mxu1 %v1909_v0  ;;  %927 = vmatprep.mubr.f32.mxu0 %v1909_v0 }
  0xd5   : > { %v840_v4 = vpop.permute.xlu1 %839  ;;  %v708_v8 = vpop.permute.xlu0 %707 }
  0xd6   : > { %1738 = vmatmul.mubr.msk.f32.gmra.mxu1 %vm316_vm2, %v708_v8  ;;  %1744 = vmatmul.mubr.msk.f32.vlgmr.msra.gmra.mxu0 %vm316_vm2, %v838_v6 }
  0xd7   : > { %807 = vmatprep.mubr.f32.mxu1 %v1909_v0  ;;  %933 = vmatprep.mubr.f32.mxu0 %v1909_v0 }
  0xd9   : > { %v842_v9 = vpop.permute.xlu1 %841  ;;  %v710_v10 = vpop.permute.xlu0 %709 }
  0xda   : > { %1739 = vmatmul.mubr.msk.f32.gmra.mxu1 %vm316_vm2, %v710_v10  ;;  %1745 = vmatmul.mubr.msk.f32.gmra.mxu0 %vm316_vm2, %v840_v4 }
  0xdb   : > { %813 = vmatprep.mubr.f32.mxu1 %v1909_v0  ;;  %939 = vmatprep.mubr.f32.mxu0 %v1909_v0 }
  0xdd   : > { %v844_v11 = vpop.permute.xlu1 %843  ;;  %v712_v12 = vpop.permute.xlu0 %711 }
  0xde   : > { %1740 = vmatmul.mubr.msk.f32.gmra.mxu1 %vm316_vm2, %v712_v12  ;;  %1746 = vmatmul.mubr.msk.f32.gmra.mxu0 %vm316_vm2, %v842_v9 }
  0xdf   : > { %819 = vmatprep.mubr.f32.mxu1 %v1909_v0  ;;  %945 = vmatprep.mubr.f32.mxu0 %v1909_v0 }
  0xe1   : > { %v976_v13 = vpop.permute.xlu1 %975  ;;  %v714_v14 = vpop.permute.xlu0 %713 }
  0xe2   : > { %1741 = vmatmul.mubr.msk.f32.gmra.mxu1 %vm316_vm2, %v714_v14  ;;  %1747 = vmatmul.mubr.msk.f32.gmra.mxu0 %vm316_vm2, %v844_v11 }
  0xe3   : > { %951 = vmatprep.mubr.f32.mxu0 %v1909_v0  ;;  %1076 = vmatprep.mubr.f32.mxu1 %v1909_v0 }
  0xe5   : > { %v974_v15 = vpop.permute.xlu1 %973  ;;  %v978_v16 = vpop.permute.xlu0 %977 }
  0xe6   : > { %v980_v17 = vsel %vm979_vm10, %v974_v15, %v976_v13  ;;  %v981_v18 = vsel %vm979_vm10, %v976_v13, %v978_v16 }
  0xe7   : > { %v984_v19 = vsel %vm2163_vm7, %v980_v17, 0.0  ;;  %v985_v20 = vsel %vm2167_vm8, %v981_v18, 0.0 }
  0xe8   : > { %1749 = vmatprep.subr.msk.mxu1 %vm327_vm1, %v985_v20 }
  0xe9   : > { %v1125_v21 = vpop.permute.xlu1 %1124  ;;  %1750 = vmatpush1.msk.msra.mxu1 %vm327_vm1, %v984_v19  ;;  %v846_v22 = vpop.permute.xlu0 %845 }
  0xea   : > { %1748 = vmatmul.mubr.msk.f32.gmra.mxu0 %vm316_vm2, %v846_v22 }
  0xeb   : > { %1225 = vmatprep.mubr.f32.mxu0 %v1909_v0 }
  0xed   : > { %v1123_v23 = vpop.permute.xlu1 %1122  ;;  %v1127_v24 = vpop.permute.xlu0 %1126 }
  0xee   : > { %v1129_v25 = vsel %vm1128_vm11, %v1123_v23, %v1125_v21  ;;  %v1130_v26 = vsel %vm1128_vm11, %v1125_v21, %v1127_v24 }
  0xef   : > { %v1133_v27 = vsel %vm2129_vm4, %v1129_v25, 0.0  ;;  %v1134_v28 = vsel %vm2133_vm5, %v1130_v26, 0.0 }
  0xf0   : > { %1756 = vmatprep.subr.msk.mxu0 %vm327_vm1, %v1134_v28 }
  0xf1   : > { %v1136_v29 = vpop.permute.xlu1 %1135  ;;  %1757 = vmatpush1.msk.msra.mxu0 %vm327_vm1, %v1133_v27  ;;  %v987_v30 = vpop.permute.xlu0 %986 }
  0xf2   : > { %1751 = vmatmul.mubr.msk.f32.vlgmr.msra.gmra.mxu1 %vm316_vm2, %v987_v30  ;;  %1758 = vmatmul.mubr.msk.f32.vlgmr.msra.gmra.mxu0 %vm316_vm2, %v1136_v29 }
  0xf3   : > { %1082 = vmatprep.mubr.f32.mxu1 %v1909_v0  ;;  %1231 = vmatprep.mubr.f32.mxu0 %v1909_v0 }
  0xf5   : > { %v1138_v31 = vpop.permute.xlu1 %1137  ;;  %v989_v32 = vpop.permute.xlu0 %988 }
  0xf6   : > { %1752 = vmatmul.mubr.msk.f32.gmra.mxu1 %vm316_vm2, %v989_v32  ;;  %1759 = vmatmul.mubr.msk.f32.gmra.mxu0 %vm316_vm2, %v1138_v31 }
  0xf7   : > { %1088 = vmatprep.mubr.f32.mxu1 %v1909_v0  ;;  %1237 = vmatprep.mubr.f32.mxu0 %v1909_v0 }
  0xf9   : > { %v1140_v33 = vpop.permute.xlu1 %1139  ;;  %v991_v34 = vpop.permute.xlu0 %990 }
  0xfa   : > { %1753 = vmatmul.mubr.msk.f32.gmra.mxu1 %vm316_vm2, %v991_v34  ;;  %1760 = vmatmul.mubr.msk.f32.gmra.mxu0 %vm316_vm2, %v1140_v33 }
  0xfb   : > { %1094 = vmatprep.mubr.f32.mxu1 %v1909_v0  ;;  %1243 = vmatprep.mubr.f32.mxu0 %v1909_v0 }
  0xfd   : > { %v1142_v35 = vpop.permute.xlu1 %1141  ;;  %v993_v36 = vpop.permute.xlu0 %992 }
  0xfe   : > { %1754 = vmatmul.mubr.msk.f32.gmra.mxu1 %vm316_vm2, %v993_v36  ;;  %1761 = vmatmul.mubr.msk.f32.gmra.mxu0 %vm316_vm2, %v1142_v35 }
  0xff   : > { %1100 = vmatprep.mubr.f32.mxu1 %v1909_v0  ;;  %1249 = vmatprep.mubr.f32.mxu0 %v1909_v0 }
 0x101   : > { %v1284_v37 = vpop.permute.xlu1 %1283  ;;  %v995_v38 = vpop.permute.xlu0 %994 }
 0x102   : > { %1755 = vmatmul.mubr.msk.f32.gmra.mxu1 %vm316_vm2, %v995_v38 }
 0x103   : > { %1368 = vmatprep.mubr.f32.mxu1 %v1909_v0 }
 0x105   : > { %v1144_v39 = vpop.permute.xlu1 %1143  ;;  %v1286_v40 = vpop.permute.xlu0 %1285 }
 0x106   : > { %v1289_v41 = vsel %vm1287_vm12, %v1284_v37, %v1286_v40  ;;  %1762 = vmatmul.mubr.msk.f32.gmra.mxu0 %vm316_vm2, %v1144_v39 }
 0x107   : > { %1763 = vmatprep.subr.msk.mxu1 %vm327_vm1, %v1289_v41  ;;  %1517 = vmatprep.mubr.f32.mxu0 %v1909_v0 }
 0x109   : > { %v1417_v42 = vpop.permute.xlu1 %1416  ;;  %v1282_v43 = vpop.permute.xlu0 %1281 }
 0x10a   : > { %v1288_v44 = vsel %vm1287_vm12, %v1282_v43, %v1284_v37 }
 0x10b   : > { %1764 = vmatpush1.msk.msra.mxu1 %vm327_vm1, %v1288_v44 }
 0x10d   : > { %v1415_v45 = vpop.permute.xlu1 %1414  ;;  %v1419_v46 = vpop.permute.xlu0 %1418 }
 0x10e   : > { %v1421_v49 = vsel %vm1420_vm13, %v1415_v45, %v1417_v42  ;;  %v1422_v50 = vsel %vm1420_vm13, %v1417_v42, %v1419_v46 }
 0x10f   : > { %v1425_v51 = vsel %vm2163_vm7, %v1421_v49, 0.0  ;;  %v1426_v52 = vsel %vm2167_vm8, %v1422_v50, 0.0 }
 0x110   : > { %1770 = vmatprep.subr.msk.mxu0 %vm327_vm1, %v1426_v52 }
 0x111   : > { %1771 = vmatpush1.msk.msra.mxu0 %vm327_vm1, %v1425_v51  ;;  %v1269_v53 = vpop.permute.xlu0 %1268  ;;  %v1428_v54 = vpop.permute.xlu1 %1427 }
 0x112   : > { %1765 = vmatmul.mubr.msk.f32.vlgmr.msra.gmra.mxu1 %vm316_vm2, %v1269_v53  ;;  %1772 = vmatmul.mubr.msk.f32.vlgmr.msra.gmra.mxu0 %vm316_vm2, %v1428_v54 }
 0x113   : > { %1374 = vmatprep.mubr.f32.mxu1 %v1909_v0  ;;  %1523 = vmatprep.mubr.f32.mxu0 %v1909_v0 }
 0x115   : > { %v1271_v55 = vpop.permute.xlu0 %1270  ;;  %v1430_v47 = vpop.permute.xlu1 %1429 }
 0x116   : > { %1766 = vmatmul.mubr.msk.f32.gmra.mxu1 %vm316_vm2, %v1271_v55  ;;  %1773 = vmatmul.mubr.msk.f32.gmra.mxu0 %vm316_vm2, %v1430_v47 }
 0x117   : > { %1380 = vmatprep.mubr.f32.mxu1 %v1909_v0  ;;  %1529 = vmatprep.mubr.f32.mxu0 %v1909_v0 }
 0x119   : > { %v1273_v48 = vpop.permute.xlu0 %1272  ;;  %v1432_v56 = vpop.permute.xlu1 %1431 }
 0x11a   : > { %1767 = vmatmul.mubr.msk.f32.gmra.mxu1 %vm316_vm2, %v1273_v48  ;;  %1774 = vmatmul.mubr.msk.f32.gmra.mxu0 %vm316_vm2, %v1432_v56 }
 0x11b   : > { %1386 = vmatprep.mubr.f32.mxu1 %v1909_v0  ;;  %1535 = vmatprep.mubr.f32.mxu0 %v1909_v0 }
 0x11d   : > { %v1275_v57 = vpop.permute.xlu0 %1274  ;;  %v1434_v58 = vpop.permute.xlu1 %1433 }
 0x11e   : > { %1768 = vmatmul.mubr.msk.f32.gmra.mxu1 %vm316_vm2, %v1275_v57  ;;  %1775 = vmatmul.mubr.msk.f32.gmra.mxu0 %vm316_vm2, %v1434_v58 }
 0x11f   : > { %1392 = vmatprep.mubr.f32.mxu1 %v1909_v0  ;;  %1541 = vmatprep.mubr.f32.mxu0 %v1909_v0 }
 0x121   : > { %v1277_v59 = vpop.permute.xlu0 %1276  ;;  %v1436_v60 = vpop.permute.xlu1 %1435 }
 0x122   : > { %1769 = vmatmul.mubr.msk.f32.gmra.mxu1 %vm316_vm2, %v1277_v59  ;;  %1776 = vmatmul.mubr.msk.f32.gmra.mxu0 %vm316_vm2, %v1436_v60 }
 0x175   : > { %v2295_v61 = vpop.f32.mrf.mxu0  ;;  %v2297_v62 = vpop.f32.mrf.mxu1 }
 0x177   : > { %v2299_v63 = vpop.f32.mrf.mxu0  ;;  %v2301_v2 = vpop.f32.mrf.mxu1 }
 0x179   : > { %v2303_v3 = vpop.f32.mrf.mxu0  ;;  %v2305_v5 = vpop.f32.mrf.mxu1 }
 0x17b   : > { %v2307_v1 = vpop.f32.mrf.mxu0  ;;  %v2309_v0 = vpop.f32.mrf.mxu1 }
 0x17d   : > { %v2311_v6 = vpop.f32.mrf.mxu0  ;;  %v509_v7 = vpop.f32.mrf.mxu1 }
 0x17e   : > { %v510_v60 = vadd.f32 %v509_v7, %v2295_v61 }
 0x17f   : > { %v2313_v4 = vpop.f32.mrf.mxu0  ;;  %v511_v8 = vpop.f32.mrf.mxu1 }
 0x181   : > { %v515_v9 = vpop.f32.mrf.mxu1 }
 0x182   : > { %v648_v10 = vpop.f32.mrf.mxu0 }
 0x183   : > { %v517_v11 = vpop.f32.mrf.mxu1 }
 0x184   : > { %v650_v12 = vpop.f32.mrf.mxu0 }
 0x185   : > { %v521_v13 = vpop.f32.mrf.mxu1 }
 0x186   : > { %v654_v14 = vpop.f32.mrf.mxu0  ;;  %v522_v7 = vadd.f32 %v521_v13, %v2311_v6 }
 0x187   : > { %v2315_v15 = vpop.f32.mrf.mxu1 }
 0x188   : > { %v656_v16 = vpop.f32.mrf.mxu0 }
 0x189   : > { %v2317_v17 = vpop.f32.mrf.mxu1 }
 0x18a   : > { %v2319_v18 = vpop.f32.mrf.mxu0  ;;  %v528_v6 = vadd.f32 %v2317_v17, %v2297_v62 }
 0x18b   : > { %v2321_v19 = vpop.f32.mrf.mxu1 }
 0x18c   : > { %v2323_v20 = vpop.f32.mrf.mxu0 }
 0x18d   : > { %v2325_v21 = vpop.f32.mrf.mxu1 }
 0x18e   : > { %v2327_v22 = vpop.f32.mrf.mxu0 }
 0x18f   : > { %v2329_v23 = vpop.f32.mrf.mxu1 }
 0x190   : > { %2476 = vst [vmem:[#allocation6_spill] sm:$0xff] %v2329_v23  ;;  %v2331_v24 = vpop.f32.mrf.mxu0 }
 0x192   : > { %v2333_v25 = vpop.f32.mrf.mxu0  ;;  %v797_v26 = vpop.f32.mrf.mxu1 }
 0x193   : > { %2477 = vst [vmem:[#allocation7_spill] sm:$0xff] %v2333_v25 }
 0x194   : > { %v2335_v27 = vpop.f32.mrf.mxu0  ;;  %v799_v28 = vpop.f32.mrf.mxu1 }
 0x195   : > { %2478 = vst [vmem:[#allocation8_spill] sm:$0xff] %v2335_v27  ;;  %v516_v27 = vadd.f32 %v515_v9, %v2303_v3 }
 0x196   : > { %v803_v29 = vpop.f32.mrf.mxu1  ;;  %v929_v30 = vpop.f32.mrf.mxu0 }
 0x198   : > { %v805_v31 = vpop.f32.mrf.mxu1  ;;  %v931_v32 = vpop.f32.mrf.mxu0 }
 0x19a   : > { %v935_v33 = vpop.f32.mrf.mxu0  ;;  %v809_v34 = vpop.f32.mrf.mxu1 }
 0x19c   : > { %v937_v35 = vpop.f32.mrf.mxu0  ;;  %v2337_v37 = vpop.f32.mrf.mxu1 }
 0x19e   : > { %v941_v36 = vpop.f32.mrf.mxu0  ;;  %v2341_v39 = vpop.f32.mrf.mxu1 }
 0x1a0   : > { %v2339_v38 = vpop.f32.mrf.mxu0  ;;  %v2345_v41 = vpop.f32.mrf.mxu1 }
 0x1a2   : > { %v2343_v40 = vpop.f32.mrf.mxu0  ;;  %v2349_v43 = vpop.f32.mrf.mxu1 }
 0x1a3   : > { %2480 = vst [vmem:[#allocation10_spill] sm:$0xff] %v2349_v43 }
 0x1a4   : > { %v2347_v42 = vpop.f32.mrf.mxu0  ;;  %v2353_v45 = vpop.f32.mrf.mxu1 }
 0x1a5   : > { %2479 = vst [vmem:[#allocation9_spill] sm:$0xff] %v2347_v42  ;;  %2482 = vst [vmem:[#allocation12_spill] sm:$0xff] %v2353_v45  ;;  %v677_v45 = vadd.f32 %v648_v10, %v510_v60 }
 0x1a7   : > { %v826_v25 = vadd.f32 %v797_v26, %v677_v45 }
 0x1a9   : > { %v958_v61 = vadd.f32 %v929_v30, %v826_v25  ;;  %v530_v30 = vadd.f32 %v2321_v19, %v2301_v2 }
 0x1aa   : > { %v2351_v44 = vpop.f32.mrf.mxu0 }
 0x1ab   : > { %2481 = vst [vmem:[#allocation11_spill] sm:$0xff] %v2351_v44  ;;  %v512_v44 = vadd.f32 %v511_v8, %v2299_v63 }
 0x1ac   : > { %v2355_v46 = vpop.f32.mrf.mxu0 }
 0x1ad   : > { %2483 = vst [vmem:[#allocation13_spill] sm:$0xff] %v2355_v46  ;;  %v678_v42 = vadd.f32 %v650_v12, %v512_v44  ;;  %v681_v12 = vadd.f32 %v2319_v18, %v522_v7 }
 0x1af   : > { %v830_v13 = vadd.f32 %v809_v34, %v681_v12 }
 0x1b2   : > { %v1078_v49 = vpop.f32.mrf.mxu1  ;;  %v1227_v50 = vpop.f32.mrf.mxu0 }
 0x1b3   : > { %v1107_v9 = vadd.f32 %v1078_v49, %v958_v61  ;;  %v534_v49 = vadd.f32 %v2325_v21, %v2305_v5  ;;  %v1566_v5 = vpop.permute.xlu1 %1565  ;;  %v2488_v21 = vld [vmem:[#allocation6_spill] sm:$0xff] }
 0x1b4   : > { %v1080_v51 = vpop.f32.mrf.mxu1  ;;  %v1229_v52 = vpop.f32.mrf.mxu0 }
 0x1b6   : > { %v1084_v53 = vpop.f32.mrf.mxu1  ;;  %v1233_v54 = vpop.f32.mrf.mxu0 }
 0x1b8   : > { %v1086_v55 = vpop.f32.mrf.mxu1  ;;  %v2357_v47 = vpop.f32.mrf.mxu0 }
 0x1ba   : > { %v1090_v48 = vpop.f32.mrf.mxu1  ;;  %v2359_v56 = vpop.f32.mrf.mxu0 }
 0x1bb   : > { %2484 = vst [vmem:[#allocation14_spill] sm:$0xff] %v2359_v56  ;;  %v518_v56 = vadd.f32 %v517_v11, %v2307_v1  ;;  %v524_v1 = vadd.f32 %v2315_v15, %v2313_v4  ;;  %v683_v4 = vadd.f32 %v2327_v22, %v528_v6  ;;  %v962_v15 = vadd.f32 %v941_v36, %v830_v13 }
 0x1bc   : > { %v2361_v57 = vpop.f32.mrf.mxu1  ;;  %v2363_v58 = vpop.f32.mrf.mxu0 }
 0x1bd   : > { %2485 = vst [vmem:[#allocation15_spill] sm:$0xff] %v2363_v58  ;;  %v679_v58 = vadd.f32 %v654_v14, %v516_v27  ;;  %v682_v18 = vadd.f32 %v2323_v20, %v524_v1  ;;  %v832_v20 = vadd.f32 %v2341_v39, %v683_v4  ;;  %v1111_v44 = vadd.f32 %v1090_v48, %v962_v15  ;;  %v2497_v4 = vld [vmem:[#allocation11_spill] sm:$0xff] }
 0x1be   : > { %v2365_v59 = vpop.f32.mrf.mxu1  ;;  %v2368_v46 = vpop.f32.mrf.mxu0 }
 0x1bf   : > { %2486 = vst [vmem:[#allocation16_spill] sm:$0xff] %v2365_v59  ;;  %2487 = vst [vmem:[#allocation17_spill] sm:$0xff] %v2368_v46  ;;  %v827_v59 = vadd.f32 %v799_v28, %v678_v42  ;;  %v680_v46 = vadd.f32 %v656_v16, %v518_v56  ;;  %v828_v10 = vadd.f32 %v803_v29, %v679_v58 }
 0x1c0   : > { %v2371_v43 = vpop.f32.mrf.mxu1  ;;  %v2375_v23 = vpop.f32.mrf.mxu0  ;;  %v1256_v28 = vadd.f32 %v1227_v50, %v1107_v9  ;;  %v831_v62 = vadd.f32 %v2337_v37, %v682_v18  ;;  %v684_v42 = vadd.f32 %v2331_v24, %v530_v30  ;;  %v964_v50 = vadd.f32 %v2343_v40, %v832_v20  ;;  %v2489_v40 = vld [vmem:[#allocation7_spill] sm:$0xff]  ;;  %v2493_v9 = vld [vmem:[#allocation8_spill] sm:$0xff] }
 0x1c1   : > { %v959_v3 = vadd.f32 %v931_v32, %v827_v59  ;;  %v829_v26 = vadd.f32 %v805_v31, %v680_v46  ;;  %v960_v11 = vadd.f32 %v935_v33, %v828_v10 }
 0x1c2   : > { %v2379_v63 = vpop.f32.mrf.mxu1  ;;  %v963_v2 = vadd.f32 %v2339_v38, %v831_v62  ;;  %v833_v37 = vadd.f32 %v2345_v41, %v684_v42  ;;  %v536_v41 = vadd.f32 %v2488_v21, %v2309_v0  ;;  %v2491_v56 = vld [vmem:[#allocation14_spill] sm:$0xff]  ;;  %v2499_v42 = vld [vmem:[#allocation13_spill] sm:$0xff] }
 0x1c3   : > { %v1108_v14 = vadd.f32 %v1080_v51, %v959_v3  ;;  %v961_v16 = vadd.f32 %v937_v35, %v829_v26  ;;  %v1109_v29 = vadd.f32 %v1084_v53, %v960_v11  ;;  %v1561_v35 = vpop.permute.xlu0 %1560  ;;  %v1260_v58 = vadd.f32 %v2491_v56, %v1111_v44  ;;  %v2494_v26 = vld [vmem:[#allocation10_spill] sm:$0xff] }
 0x1c4   : > { %v2391_v25 = vpop.f32.mrf.mxu1  ;;  %v1112_v39 = vadd.f32 %v2361_v57, %v963_v2  ;;  %v686_v12 = vadd.f32 %v2493_v9, %v536_v41  ;;  %v2495_v6 = vld [vmem:[#allocation15_spill] sm:$0xff] }
 0x1c5   : > { %v1110_v31 = vadd.f32 %v1086_v55, %v961_v16  ;;  %v1257_v17 = vadd.f32 %v1229_v52, %v1108_v14  ;;  %v1258_v19 = vadd.f32 %v1233_v54, %v1109_v29  ;;  %v685_v55 = vadd.f32 %v2489_v40, %v534_v49  ;;  %v2496_v29 = vld [vmem:[#allocation12_spill] sm:$0xff] }
 0x1c6   : > { %v2381_v8 = vpop.f32.mrf.mxu0  ;;  %v2492_v61 = vld [vmem:[#allocation16_spill] sm:$0xff]  ;;  %v1261_v13 = vadd.f32 %v2495_v6, %v1112_v39  ;;  %v835_v30 = vadd.f32 %v2496_v29, %v686_v12 }
 0x1c7   : > { %v1259_v51 = vadd.f32 %v2357_v47, %v1110_v31  ;;  %v2490_v47 = vld [vmem:[#allocation9_spill] sm:$0xff]  ;;  %v1113_v7 = vadd.f32 %v2492_v61, %v964_v50  ;;  %v834_v0 = vadd.f32 %v2494_v26, %v685_v55  ;;  %v1576_v49 = vpop.permute.xlu0 %1575 }
 0x1c8   : > { %v2393_v27 = vpop.f32.mrf.mxu0  ;;  %v965_v48 = vadd.f32 %v2490_v47, %v833_v37  ;;  %v967_v20 = vadd.f32 %v2499_v42, %v835_v30 }
 0x1c9   : > { %v966_v15 = vadd.f32 %v2497_v4, %v834_v0 }
 0x1ca   : > { %v1114_v1 = vadd.f32 %v2371_v43, %v965_v48  ;;  %v1116_v37 = vadd.f32 %v2391_v25, %v967_v20 }
 0x1cb   : > { %v1115_v2 = vadd.f32 %v2379_v63, %v966_v15 }
 0x1cc   : > { %v1263_v44 = vadd.f32 %v2375_v23, %v1114_v1 }
 0x1d2   : > { %v1370_v32 = vpop.f32.mrf.mxu1  ;;  %v1519_v33 = vpop.f32.mrf.mxu0 }
 0x1d3   : > { %v1399_v34 = vadd.f32 %v1370_v32, %v1256_v28 }
 0x1d4   : > { %v1372_v45 = vpop.f32.mrf.mxu1  ;;  %v1521_v46 = vpop.f32.mrf.mxu0 }
 0x1d5   : > { %v1400_v22 = vadd.f32 %v1372_v45, %v1257_v17  ;;  %v1548_v36 = vadd.f32 %v1519_v33, %v1399_v34  ;;  %v2498_v33 = vld [vmem:[#allocation17_spill] sm:$0xff] }
 0x1d6   : > { %v1376_v24 = vpop.f32.mrf.mxu1  ;;  %v1525_v38 = vpop.f32.mrf.mxu0  ;;  %v1262_v62 = vadd.f32 %v2498_v33, %v1113_v7 }
 0x1d7   : > { %v1401_v52 = vadd.f32 %v1376_v24, %v1258_v19  ;;  %v1549_v53 = vadd.f32 %v1521_v46, %v1400_v22  ;;  %v1583_v54 = vadd.f32 %v1561_v35, %v1548_v36  ;;  %v1264_v24 = vadd.f32 %v2381_v8, %v1115_v2 }
 0x1d8   : > { %v1378_v59 = vpop.f32.mrf.mxu1  ;;  %v1527_v60 = vpop.f32.mrf.mxu0 }
 0x1d9   : > { %v1584_v10 = vadd.f32 %v1561_v35, %v1549_v53  ;;  %1593 = vst [vmem:[%s2412_s26] sm:$0xff] %v1583_v54  ;;  %v1402_v57 = vadd.f32 %v1378_v59, %v1259_v51  ;;  %v1550_v3 = vadd.f32 %v1525_v38, %v1401_v52  ;;  %v1571_v35 = vpop.permute.xlu1 %1570  ;;  %v1265_v53 = vadd.f32 %v2393_v27, %v1116_v37 }
 0x1da   : > { %v1382_v11 = vpop.f32.mrf.mxu1  ;;  %v1531_v14 = vpop.f32.mrf.mxu0 }
 0x1db   : > { %1594 = vst [vmem:[%s2412_s26 + $0x8] sm:$0xff] %v1584_v10  ;;  %v1585_v16 = vadd.f32 %v1566_v5, %v1550_v3  ;;  %v1403_v18 = vadd.f32 %v1382_v11, %v1260_v58  ;;  %v1551_v28 = vadd.f32 %v1527_v60, %v1402_v57 }
 0x1dc   : > { %v1384_v31 = vpop.f32.mrf.mxu1  ;;  %v1533_v32 = vpop.f32.mrf.mxu0 }
 0x1dd   : > { %1595 = vst [vmem:[%s2412_s26 + $0x10] sm:$0xff] %v1585_v16  ;;  %v1586_v43 = vadd.f32 %v1566_v5, %v1551_v28  ;;  %v1404_v17 = vadd.f32 %v1384_v31, %v1261_v13  ;;  %v1552_v34 = vadd.f32 %v1531_v14, %v1403_v18  ;;  %v1581_v55 = vpop.permute.xlu1 %1580 }
 0x1de   : > { %v1388_v45 = vpop.f32.mrf.mxu1  ;;  %v1537_v46 = vpop.f32.mrf.mxu0 }
 0x1df   : > { %1596 = vst [vmem:[%s2412_s26 + $0x18] sm:$0xff] %v1586_v43  ;;  %v1587_v19 = vadd.f32 %v1571_v35, %v1552_v34  ;;  %v1405_v22 = vadd.f32 %v1388_v45, %v1262_v62  ;;  %v1553_v36 = vadd.f32 %v1533_v32, %v1404_v17 }
 0x1e0   : > { %v1390_v50 = vpop.f32.mrf.mxu1  ;;  %v1539_v51 = vpop.f32.mrf.mxu0 }
 0x1e1   : > { %1597 = vst [vmem:[%s2412_s26 + $0x20] sm:$0x3] %v1587_v19  ;;  %v1588_v38 = vadd.f32 %v1571_v35, %v1553_v36  ;;  %v1406_v23 = vadd.f32 %v1390_v50, %v1263_v44  ;;  %v1554_v39 = vadd.f32 %v1537_v46, %v1405_v22 }
 0x1e2   : > { %v1394_v52 = vpop.f32.mrf.mxu1  ;;  %v1543_v63 = vpop.f32.mrf.mxu0 }
 0x1e3   : > { %1598 = vst [vmem:[%s2412_s26 + $0x28] sm:$0x3] %v1588_v38  ;;  %v1407_v54 = vadd.f32 %v1394_v52, %v1264_v24  ;;  %v1555_v5 = vadd.f32 %v1539_v51, %v1406_v23  ;;  %v1589_v25 = vadd.f32 %v1576_v49, %v1554_v39 }
 0x1e4   : > { %v1396_v21 = vpop.f32.mrf.mxu1  ;;  %v1545_v47 = vpop.f32.mrf.mxu0 }
 0x1e5   : > { %v1590_v41 = vadd.f32 %v1576_v49, %v1555_v5  ;;  %1599 = vst [vmem:[%s228_s18] sm:$0xff] %v1589_v25  ;;  %v1408_v8 = vadd.f32 %v1396_v21, %v1265_v53  ;;  %v1556_v40 = vadd.f32 %v1543_v63, %v1407_v54 }
 0x1e7   : > { %1600 = vst [vmem:[%s228_s18 + $0x8] sm:$0xff] %v1590_v41  ;;  %v1591_v48 = vadd.f32 %v1581_v55, %v1556_v40  ;;  %v1557_v56 = vadd.f32 %v1545_v47, %v1408_v8 }
 0x1e9   : > { %1601 = vst [vmem:[%s228_s18 + $0x10] sm:$0xf] %v1591_v48  ;;  %v1592_v58 = vadd.f32 %v1581_v55, %v1557_v56 }
 0x1eb   : > { %1602 = vst [vmem:[%s228_s18 + $0x18] sm:$0xf] %v1592_v58 }
 0x1ec PF: > { %p15_p8 = scmp.ge.s32.totalorder %s1973_s20, 4   ;;  %s2500_s15 = smov %s1898_s16 }
 0x1ed   : > { %s2501_s16 = smov %s1902_s17  ;;  %s2502_s17 = smov %s1983_s23 }
 0x1ee   : > { %s2503_s18 = smov %s1973_s20  ;;  %17 = sbr.rel (!%p15_p8) target bundleno = 3 (0x3), region = 84 }
 0x1f3   :  { %1640 = vsyncpa [#allocation4], 1 }
 0x1f4   :  { %1642 = vsyncpa [#allocation4 + $0x1], 1 }

</bundles_post_ra>
